<compile_context>
chip_gen: v6e
topology: v6e:2x2x1
jax: 0.10.0
libtpu: 0.0.40
codegen_flags: <defaults>
</compile_context>

<pallas_src>
import jax
import jax.numpy as jnp
from jax.experimental import pallas as pl
from jax.experimental.pallas import tpu as pltpu


def _unit_norm_kernel(x_ref, o_ref):
    # Full (padded) last dim resident in VMEM -> reduce along lanes.
    xf = x_ref[...].astype(jnp.float32)
    sq = jnp.sum(xf * xf, axis=-1, keepdims=True)          # [rt, 1]
    norm = jnp.sqrt(sq)                                     # [rt, 1]
    # One reciprocal per row (column vector), then a broadcast multiply,
    # instead of a per-element divide across the whole tile.
    inv = pl.reciprocal(norm + 1e-8, approx=False)          # [rt, 1]
    o_ref[...] = (xf * inv).astype(o_ref.dtype)


def _choose_row_tile(rows: int, d_pad: int, itemsize: int,
                     target_block_bytes: int) -> int:
    """Largest sublane-aligned row tile targeting ~target_block_bytes/block."""
    rt = max(8, (target_block_bytes // (d_pad * itemsize)) // 8 * 8)
    rows8 = ((rows + 7) // 8) * 8
    rt = min(rt, rows8)
    # Prefer a grid of >= 2 steps (v7x has 2 TensorCores) when rows allow it.
    if rows8 > 8 and rows8 <= rt:
        rt = max(8, (rows8 // 2) // 8 * 8)
    return rt


def unit_norm(x: jax.Array, target_block_bytes: int = 2 << 20) -> jax.Array:
    """x / (||x||_2 over last dim + 1e-8), matching torch.norm(dim=-1, keepdim=True)."""
    orig_shape = x.shape
    d = orig_shape[-1]
    x2 = x.reshape(-1, d)
    rows = x2.shape[0]

    # Lane-dense last dim: pad to a multiple of 128 with zeros.  Zeros
    # contribute nothing to the sum of squares, so the norm is unchanged.
    d_pad = ((d + 127) // 128) * 128
    if d_pad != d:
        x2 = jnp.pad(x2, ((0, 0), (0, d_pad - d)))

    itemsize = jnp.dtype(x.dtype).itemsize
    rt = _choose_row_tile(rows, d_pad, itemsize, target_block_bytes)

    # Pad rows to a multiple of the tile (padding rows are zero -> output 0).
    rows_pad = ((rows + rt - 1) // rt) * rt
    if rows_pad != rows:
        x2 = jnp.pad(x2, ((0, rows_pad - rows), (0, 0)))

    grid = (rows_pad // rt,)

    out = pl.pallas_call(
        _unit_norm_kernel,
        out_shape=jax.ShapeDtypeStruct((rows_pad, d_pad), x.dtype),
        grid_spec=pltpu.PrefetchScalarGridSpec(
            num_scalar_prefetch=0,
            grid=grid,
            in_specs=[pl.BlockSpec((rt, d_pad), lambda i: (i, 0))],
            out_specs=pl.BlockSpec((rt, d_pad), lambda i: (i, 0)),
        ),
        compiler_params=pltpu.CompilerParams(
            dimension_semantics=("parallel",),
        ),
    )(x2)

    out = out[:rows, :d]
    return out.reshape(orig_shape)


def _reference(x):
    norms = jnp.linalg.norm(x.astype(jnp.float32), axis=-1, keepdims=True)
    return (x.astype(jnp.float32) / (norms + 1e-8)).astype(x.dtype)


if __name__ == "__main__":
    key = jax.random.PRNGKey(0)

    # Small shape consistent with a generic (batch, seq, hidden) tensor.
    x = jax.random.normal(key, (2, 8, 32), dtype=jnp.float32)
    y = jax.block_until_ready(unit_norm(x))
    assert y.shape == x.shape
    assert jnp.allclose(y, _reference(x), atol=1e-5, rtol=1e-5), "mismatch vs reference"

    # Second shape exercising both row and lane padding paths.
    x2 = jax.random.normal(jax.random.PRNGKey(1), (3, 5, 32), dtype=jnp.float32)
    y2 = jax.block_until_ready(unit_norm(x2))
    assert y2.shape == x2.shape
    assert jnp.allclose(y2, _reference(x2), atol=1e-5, rtol=1e-5), "mismatch vs reference (padded)"

    print("KERNEL_OK")
</pallas_src>

<mosaic_0001>
module attributes {stable_mosaic.version = 11 : i64} {
  func.func @_unit_norm_kernel(%arg0: i32, %arg1: memref<8x128xf32, #tpu.memory_space<vmem>>, %arg2: memref<8x128xf32, #tpu.memory_space<vmem>>) attributes {dimension_semantics = [#tpu.dimension_semantics<parallel>], iteration_bounds = array<i64: 2>, scalar_prefetch = 0 : i64, scratch_operands = 0 : i64, tpu.core_type = #tpu.core_type<tc>, window_params = [{transform_indices = @transform_0, window_bounds = array<i64: 8, 128>}, {transform_indices = @transform_1, window_bounds = array<i64: 8, 128>}]} {
    %c0 = arith.constant 0 : index
    %c0_0 = arith.constant 0 : index
    %0 = vector.load %arg1[%c0, %c0_0] : memref<8x128xf32, #tpu.memory_space<vmem>>, vector<8x128xf32>
    %1 = arith.mulf %0, %0 : vector<8x128xf32>
    %cst = arith.constant dense<0.000000e+00> : vector<8xf32>
    %2 = vector.multi_reduction <add>, %1, %cst [1] : vector<8x128xf32> to vector<8xf32>
    %3 = vector.shape_cast %2 : vector<8xf32> to vector<8x1xf32>
    %4 = math.sqrt %3 : vector<8x1xf32>
    %cst_1 = arith.constant 9.99999993E-9 : f32
    %5 = vector.broadcast %cst_1 : f32 to vector<8x1xf32>
    %6 = arith.addf %4, %5 : vector<8x1xf32>
    %7 = tpu.reciprocal %6 : vector<8x1xf32> -> vector<8x1xf32>
    %8 = vector.broadcast %7 : vector<8x1xf32> to vector<8x128xf32>
    %9 = arith.mulf %0, %8 : vector<8x128xf32>
    %c0_2 = arith.constant 0 : index
    %c0_3 = arith.constant 0 : index
    %10 = vector.load %arg2[%c0_2, %c0_3] : memref<8x128xf32, #tpu.memory_space<vmem>>, vector<8x128xf32>
    tpu.vector_store %arg2[%c0_2, %c0_3], %9 {strides = array<i32>} : memref<8x128xf32, #tpu.memory_space<vmem>>, vector<8x128xf32>,
    return
  }
  func.func @transform_0(%arg0: i32) -> (i32, i32) {
    %c0_i32 = arith.constant 0 : i32
    %c0_i32_0 = arith.constant 0 : i32
    return %arg0, %c0_i32 : i32, i32
  }
  func.func @transform_1(%arg0: i32) -> (i32, i32) {
    %c0_i32 = arith.constant 0 : i32
    %c0_i32_0 = arith.constant 0 : i32
    return %arg0, %c0_i32 : i32, i32
  }
}

</mosaic_0001>

<bundles_post_ra>
// kernel: tpu_custom_call.1
= control target key start
LH: loop header
LB: loop body
LE: loop exit
PB: predicated region body
PF: predicated region fallthrough
CT: control target
= control target key end

     0   :  { %6 = vsyncpa [#allocation3], 0  ;;  %s540_s0 = inlined_call_operand.hbm [shape: f32[16,128], index: 0, kind: input, shape index: {}]   ;;  %s541_s1 = inlined_call_operand.hbm [shape: f32[16,128], index: 1, kind: output, shape index: {}]  }
   0x1   :  { %8 = vsyncpa [#allocation3 + $0x1], 0 }
   0x2   :  { %9 = vsyncpa [#allocation4], 0 }
   0x3   :  { %11 = vsyncpa [#allocation4 + $0x1], 0  ;;  %s399_s6 = smov 0   ;;  %s401_s7 = smov 0  }
   0x4   :  { %s403_s8 = smov 0   ;;  %s405_s9 = smov 0  }
   0x5 LB: > { %s420_s10 = sadd.s32 4294967295, %s385_s9   ;;  %s231_s11 = sadd.s32 4294967294, %s385_s9   ;;  %s385_s9 = sphi %s405_s9, %s558_s9   ;;  %s381_s8 = sphi %s403_s8, %s557_s8   ;;  %s377_s7 = sphi %s401_s7, %s556_s7   ;;  %s373_s6 = sphi %s399_s6, %s555_s6  }
   0x6   : > { %s424_s12 = sadd.s32 1, %s385_s9   ;;  %s24_s13 = sadd.s32 1, %s381_s8 }
   0x7   : > { %s21_s14 = ssub.s32 %s385_s9, %s424_s12  ;;  %p31_p0 = scmp.ne.s32.totalorder %s381_s8, %s377_s7 }
   0x8   : > { %p22_p1 = scmp.eq.s32.totalorder %s21_s14, 0  ;;  %p32_p2 = scmp.eq.s32.totalorder %s385_s9, 0 }
   0x9   : > { %p37_p3 = scmp.ne.s32.totalorder %s377_s7, %s373_s6  ;;  %p38_p4 = scmp.eq.s32.totalorder %s420_s10, 0 }
   0xa   : > { %s436_s15 = scalar_select %p22_p1, %s381_s8, %s24_s13  }
   0xb   : > { %p438_p5 = por %p32_p2, %p31_p0  ;;  %p442_p6 = por %p38_p4, %p37_p3 }
   0xc   : > { %p61_p7 = scmp.eq.s32.totalorder %s420_s10, 1  ;;  %p67_p8 = scmp.eq.s32.totalorder %s231_s11, 1 }
   0xd   : > { %s545_s17 = scalar_select %p442_p6, 1, 0 }
   0xe   : > { %p255_p10 = scmp.lt.s32.totalorder %s385_s9, 2  ;;  %p449_p11 = por %p61_p7, %p31_p0 }
   0xf   : > { %p453_p12 = por %p67_p8, %p37_p3  ;;  %s87_s20 = sand.u32 1, %s381_s8  }
  0x10   : > { %s546_s18 = scalar_select %p449_p11, 1, 0 }
  0x11   : > { %s547_s19 = scalar_select %p453_p12, 1, 0 }
  0x12   : > { %s235_s21 = sshll.u32 %s385_s9, 7  ;;  %s234_s22 = sshll.u32 %s87_s20, 3 }
  0x13   : > { %s462_s25 = scalar_lea.hbm %s540_s0, %s235_s21  ;;  %s91_s26 = scalar_lea.vmem [#allocation2], %s234_s22 }
  0x14   : > { %s98_s27 = sshll.u32 %s91_s26, 4  ;;  %p466_p13 = pnand %p255_p10, %p438_p5  ;;  %s470_s27 = int_to_ptr.vmem [resolvable:$true] %s98_s27 }
  0x15   : > { %s88_s29 = scalar_lea.sflag [#allocation3], %s87_s20  ;;  %s293_s30 = scalar_lea.hbm %s462_s25, 128 }
  0x16   : > { %p294_p2 = scmp.ne.s32.totalorder %s462_s25, %s293_s30  ;;  %p295_p3 = pneg %p466_p13 }
  0x17   : > { %s298_s4 = scalar_lea.hbm %s540_s0, 256  ;;  %p299_p5 = scmp.lt.s32.totalorder %s462_s25, %s540_s0 }
  0x18   : > { %p296_p4 = pnand %p295_p3, %p294_p2  ;;  %p300_p8 = scmp.lt.s32.totalorder %s298_s4, %s293_s30 }
  0x1a   : > { %p297_p7 = pneg %p296_p4  ;;  %p301_p10 = por %p300_p8, %p299_p5 }
  0x1c   : > { %p302_p9 = pnand %p301_p10, %p297_p7 }
  0x1e   : > { %305 = shalt.err (!%p302_p9)
}
  0x1f   : > { %s306_s13 = scalar_lea.vmem %s470_s27, 128  ;;  %s387_s14 = smov [#allocation2]  }
  0x20   : > { %p307_p0 = scmp.ne.s32.totalorder %s470_s27, %s306_s13  ;;  %s311_s16 = sshll.u32 %s387_s14, 4  ;;  %s312_s16 = int_to_ptr.vmem [resolvable:$false] %s311_s16 }
  0x21   : > { %s313_s20 = scalar_lea.vmem %s312_s16, 256  ;;  %p314_p4 = scmp.lt.s32.totalorder %s470_s27, %s312_s16 }
  0x22   : > { %p309_p1 = pnand %p307_p0, %p295_p3  ;;  %p315_p12 = scmp.lt.s32.totalorder %s313_s20, %s306_s13 }
  0x24   : > { %p310_p2 = pneg %p309_p1  ;;  %p316_p11 = por %p315_p12, %p314_p4 }
  0x26   : > { %p317_p6 = pnand %p316_p11, %p310_p2 }
  0x28   : > { %320 = shalt.err (!%p317_p6)
}
  0x29   : > { %250 = dma.hbm_to_vmem [thread:$0]  (!%p466_p13), %s462_s25, 128, %s470_s27, %s88_s29  }
  0x2a   : > { %p549_p9 = scmp.lt.s32.totalorder %s385_s9, 3  ;;  %p550_p7 = scmp.ge.s32.totalorder %s385_s9, 1 }
  0x2c   : > { %p104_p0 = pnand %p550_p7, %p549_p9 }
  0x2d   : > { %s497_s21 = sand.u32 (!%p104_p0), 1, %s377_s7   ;;  %p551_p6 = scmp.ne.s32.totalorder (!%p104_p0), %s545_s17, 0 }
  0x2e   : > { %107 = sbr.rel (%p104_p0) target bundleno = 242 (0xf2), region = 24  ;;  %s237_s22 = sshll.u32 (!%p104_p0), %s497_s21, 3 }
  0x2f   : > { %s110_s23 = scalar_lea.sflag (!%p104_p0), [#allocation3], %s497_s21  ;;  %s113_s24 = scalar_lea.vmem (!%p104_p0), [#allocation2], %s237_s22 }
  0x33   : > { %364 = dma.done.wait (%p551_p6), %s110_s23, 128  }
  0x34   : > { %366 = vsyncadd (%p551_p6), %s110_s23, 4294967168  ;;  %v132_v0 = vld [vmem:[%s113_s24] sm:$0xff]  ;;  %s240_s25 = sshll.u32 %s420_s10, 7  ;;  %s131_s17 = scalar_lea.vmem [#allocation5], %s237_s22 }
  0x35   : > { %v133_v1 = vmul.f32 %v132_v0, %v132_v0  ;;  %s161_s26 = sshll.u32 %s131_s17, 4  ;;  %s159_s29 = scalar_lea.hbm %s541_s1, %s240_s25  ;;  %s162_s26 = int_to_ptr.vmem [resolvable:$true] %s161_s26 }
  0x36   : > { %s148_s30 = scalar_lea.sflag [#allocation4], %s497_s21  ;;  %s321_s2 = scalar_lea.vmem %s162_s26, 128 }
  0x37   : > { %134 = vadd.xlane.f32.xlu0 %v133_v1  ;;  %p322_p11 = scmp.ne.s32.totalorder %s162_s26, %s321_s2  ;;  %p552_p12 = scmp.ne.s32.totalorder %s546_s18, 0 }
  0x38   : > { %s388_s3 = smov [#allocation5]  }
  0x39   : > { %p323_p13 = pnand %p322_p11, %p552_p12  ;;  %s325_s4 = sshll.u32 %s388_s3, 4  ;;  %s326_s4 = int_to_ptr.vmem [resolvable:$false] %s325_s4 }
  0x3a   : > { %s327_s10 = scalar_lea.vmem %s326_s4, 256  ;;  %p328_p3 = scmp.lt.s32.totalorder %s162_s26, %s326_s4 }
  0x3b   : > { %p324_p1 = pneg %p323_p13  ;;  %p329_p5 = scmp.lt.s32.totalorder %s327_s10, %s321_s2 }
  0x3d   : > { %p330_p8 = por %p329_p5, %p328_p3 }
  0x3f   : > { %p331_p10 = pnand %p330_p8, %p324_p1 }
  0xc0   : > { %v135_v2 = vpop.xlane.xlu0 %134 }
  0xc1   : > { %289 = vrsqrt.f32 %v135_v2  ;;  %vm138_vm0 = vcmp.eq.f32.partialorder %v135_v2, inf  ;;  %v141_v5 = vand.u32 2147483648, %v135_v2  ;;  %vm140_vm1 = vcmp.eq.f32.partialorder %v135_v2, 0.0 }
  0xce   : > { %v290_v3 = vpop.eup %289 }
  0xcf   : > { %v137_v4 = vmul.f32 %v290_v3, %v135_v2 }
  0xd1   : > { %v139_v6 = vsel %vm138_vm0, %v135_v2, %v137_v4 }
  0xd2   : > { %v142_v7 = vsel %vm140_vm1, %v141_v5, %v139_v6 }
  0xd3   : > { %v143_v8 = vadd.f32 1e-08, %v142_v7 }
  0xd5   : > { %291 = vrcp.f32 %v143_v8 }
  0xe2   : > { %v292_v9 = vpop.eup %291 }
  0xe3   : > { %v145_v10 = vmul.f32 %v292_v9, %v132_v0 }
  0xe5   : > { %146 = vst [vmem:[%s131_s17] sm:$0xff] %v145_v10 }
  0xe6   : > { %334 = shalt.err (!%p331_p10)
}
  0xe7   : > { %s335_s5 = scalar_lea.hbm %s159_s29, 128  ;;  %s339_s14 = scalar_lea.hbm %s541_s1, 256 }
  0xe8   : > { %p336_p2 = scmp.ne.s32.totalorder %s159_s29, %s335_s5  ;;  %p340_p7 = scmp.lt.s32.totalorder %s159_s29, %s541_s1 }
  0xe9   : > { %p341_p0 = scmp.lt.s32.totalorder %s339_s14, %s335_s5 }
  0xea   : > { %p337_p4 = pnand %p336_p2, %p552_p12 }
  0xeb   : > { %p342_p6 = por %p341_p0, %p340_p7 }
  0xec   : > { %p338_p9 = pneg %p337_p4 }
  0xee   : > { %p343_p11 = pnand %p342_p6, %p338_p9 }
  0xf0   : > { %346 = shalt.err (!%p343_p11)
}
  0xf1   : > { %245 = dma.vmem_to_hbm [thread:$0]  (%p552_p12), %s162_s26, 128, %s159_s29, %s148_s30  }
  0xf2 PF: > { %s173_s21 = sand.u32 1, %s373_s6   ;;  %p553_p13 = scmp.ne.s32.totalorder %s547_s19, 0 }
  0xf3   : > { %p554_p1 = scmp.ge.s32.totalorder %s385_s9, 2  ;;  %s174_s22 = scalar_lea.sflag [#allocation4], %s173_s21 }
  0xf5   : > { %p252_p3 = pnand %p554_p1, %p553_p13 }
  0xf7   : > { %p253_p5 = pneg %p252_p3 }
  0xf9   : > { %368 = dma.done.wait (%p253_p5), %s174_s22, 128  }
  0xfa   : > { %370 = vsyncadd (%p253_p5), %s174_s22, 4294967168  ;;  %p14_p8 = scmp.ge.s32.totalorder %s424_s12, 4   ;;  %s555_s6 = smov %s377_s7 }
  0xfb   : > { %s556_s7 = smov %s381_s8  ;;  %s557_s8 = smov %s436_s15 }
  0xfc   : > { %s558_s9 = smov %s424_s12  ;;  %16 = sbr.rel (!%p14_p8) target bundleno = 5 (0x5), region = 69 }
 0x101   :  { %179 = vsyncpa [#allocation3], 1 }
 0x102   :  { %181 = vsyncpa [#allocation3 + $0x1], 1 }
 0x103   :  { %182 = vsyncpa [#allocation4], 1 }
 0x104   :  { %184 = vsyncpa [#allocation4 + $0x1], 1 }

</bundles_post_ra>
